<compile_context>
chip_gen: v7x
topology: tpu7x:2x2x1
jax: 0.10.0
libtpu: 0.0.40
codegen_flags: <defaults>
</compile_context>

<pallas_src>
import jax
import jax.numpy as jnp
from jax.experimental import pallas as pl
from jax.experimental.pallas import tpu as pltpu


def _round_up(n, m):
    return ((n + m - 1) // m) * m


# Column layout of the packed f32 parameter slab (shape [32, 128]):
#   cols 0:2 -> w1 (rows 0:16)   Linear(2,16) weight, [out, in]
#   col  2   -> b1 (rows 0:16)
#   col  3   -> b2 (rows 0:32)
#   col  4   -> b3 (rows 0:32)
#   col  5   -> w4 as a column (rows 0:32)   Linear(32,1) weight, transposed
#   col  6   -> b4 (row 0)
_PK_COLS = 128


def mlp2_kernel(x_ref, pk_ref, w2_ref, w3_ref, o_ref):
    # x tile: [2, tB] (batch on the lane axis).
    x = x_ref[...].astype(jnp.float32)
    pk = pk_ref[...]                       # [32, 128] f32 packed small params

    w1c0 = pk[0:16, 0:1]                   # [16, 1]
    w1c1 = pk[0:16, 1:2]
    b1 = pk[0:16, 2:3]
    b2 = pk[:, 3:4]                        # [32, 1]
    b3 = pk[:, 4:5]
    w4c = pk[:, 5:6]                       # [32, 1]
    b4 = pk[0:1, 6:7]                      # [1, 1]

    # Layer 1: Linear(2,16) + ReLU on the VPU in f32 (K=2 would waste an MXU pass).
    h = jnp.maximum(w1c0 * x[0:1, :] + w1c1 * x[1:2, :] + b1, 0.0)   # [16, tB]
    # Dropout(0.2) -> identity at inference.

    # Layers 2/3 on the MXU. Operand dtype = w2_ref.dtype (bf16 by default),
    # accumulation always f32.
    mxu_dtype = w2_ref.dtype
    h = jnp.dot(w2_ref[...], h.astype(mxu_dtype),
                preferred_element_type=jnp.float32) + b2             # [32, tB]
    h = jnp.maximum(h, 0.0)
    # Dropout(0.2) -> identity at inference.

    h = jnp.dot(w3_ref[...], h.astype(mxu_dtype),
                preferred_element_type=jnp.float32) + b3             # [32, tB]
    h = jnp.maximum(h, 0.0)

    # Layer 4: Linear(32,1) on VPU/XLU instead of an M=1 MXU matmul:
    # lane-broadcast the w4 column, multiply, reduce over the 32-feature
    # (sublane) axis.
    out = jnp.sum(w4c * h, axis=0, keepdims=True) + b4               # [1, tB]
    o_ref[...] = out.astype(o_ref.dtype)


def pack_params(params, mxu_dtype=jnp.bfloat16):
    """Pack all small f32 parameters into one lane-padded slab; cast w2/w3."""
    pk = jnp.zeros((32, _PK_COLS), jnp.float32)
    pk = pk.at[0:16, 0:2].set(params["w1"].astype(jnp.float32))
    pk = pk.at[0:16, 2:3].set(params["b1"].astype(jnp.float32))
    pk = pk.at[0:32, 3:4].set(params["b2"].astype(jnp.float32))
    pk = pk.at[0:32, 4:5].set(params["b3"].astype(jnp.float32))
    pk = pk.at[0:32, 5:6].set(params["w4"].T.astype(jnp.float32))
    pk = pk.at[0:1, 6:7].set(params["b4"].astype(jnp.float32))
    w2 = params["w2"].astype(mxu_dtype)
    w3 = params["w3"].astype(mxu_dtype)
    return pk, w2, w3


def mlp2_forward(x, params, *, tile_b=8192, mxu_dtype=jnp.bfloat16):
    """x: [B, 2].  params: dict with weights [out, in] and biases [out, 1]."""
    B = x.shape[0]
    pk, w2, w3 = pack_params(params, mxu_dtype)

    # Lane padding: at most one 128-lane group of padding past B.
    b_pad = _round_up(max(B, 1), 128)
    tb = min(tile_b, b_pad)
    if tb == b_pad and b_pad >= 256:
        # Ensure >=2 grid steps so the "parallel" axis shards across both
        # TensorCores on v7x (no-op cost on v5e/v6e).
        tb = _round_up(b_pad // 2, 128)
    grid = (pl.cdiv(b_pad, tb),)   # partial final block handled by Pallas

    # Batch-on-lanes layout: [2, B_pad], zero-padded past B.
    xt = jnp.zeros((2, b_pad), jnp.float32).at[:, :B].set(x.astype(jnp.float32).T)

    # Parameters: full-array blocks, constant index_map -> DMA'd once,
    # VMEM-resident across all grid steps.
    resident = lambda a: pl.BlockSpec(a.shape, lambda i: (0, 0))

    param_bytes = (int(pk.size) * 4
                   + int(w2.size + w3.size) * jnp.dtype(mxu_dtype).itemsize)
    cost = pl.CostEstimate(
        flops=2 * b_pad * (2 * 16 + 16 * 32 + 32 * 32 + 32 * 1),
        transcendentals=0,
        bytes_accessed=b_pad * (2 * 4 + 4) + param_bytes,
    )

    out_t = pl.pallas_call(
        mlp2_kernel,
        out_shape=jax.ShapeDtypeStruct((1, b_pad), jnp.float32),
        grid_spec=pltpu.PrefetchScalarGridSpec(
            num_scalar_prefetch=0,
            grid=grid,
            in_specs=[
                pl.BlockSpec((2, tb), lambda i: (0, i)),   # x: batch-tiled, lane-dense
                resident(pk),
                resident(w2),
                resident(w3),
            ],
            out_specs=pl.BlockSpec((1, tb), lambda i: (0, i)),
        ),
        compiler_params=pltpu.CompilerParams(
            dimension_semantics=("parallel",),   # megacore sharding on v7x
            vmem_limit_bytes=32 << 20,           # small footprint even at tb=8192
        ),
        cost_estimate=cost,
    )(xt, pk, w2, w3)

    # Back to the PyTorch-facing [B, 1] layout (cheap XLA slice/transpose).
    return out_t[:, :B].T


def init_params(key):
    """Deterministic init matching MLP2's nn.Linear shapes.
    Weights stored [out, in] (same as PyTorch), biases [out, 1]."""
    ks = jax.random.split(key, 8)

    def linear(kw, kb, fan_in, fan_out):
        # PyTorch default init: U(-1/sqrt(fan_in), 1/sqrt(fan_in))
        bound = 1.0 / jnp.sqrt(jnp.float32(fan_in))
        w = jax.random.uniform(kw, (fan_out, fan_in), jnp.float32, -bound, bound)
        b = jax.random.uniform(kb, (fan_out, 1), jnp.float32, -bound, bound)
        return w, b

    w1, b1 = linear(ks[0], ks[1], 2, 16)
    w2, b2 = linear(ks[2], ks[3], 16, 32)
    w3, b3 = linear(ks[4], ks[5], 32, 32)
    w4, b4 = linear(ks[6], ks[7], 32, 1)
    return {"w1": w1, "b1": b1, "w2": w2, "b2": b2,
            "w3": w3, "b3": b3, "w4": w4, "b4": b4}


def mlp2_ref(x, p):
    """Pure-JAX reference (row-major, PyTorch-equivalent) for correctness."""
    h = jnp.maximum(x @ p["w1"].T + p["b1"].T, 0.0)
    h = jnp.maximum(h @ p["w2"].T + p["b2"].T, 0.0)
    h = jnp.maximum(h @ p["w3"].T + p["b3"].T, 0.0)
    return h @ p["w4"].T + p["b4"].T


if __name__ == "__main__":
    key = jax.random.PRNGKey(0)
    k_param, k_x = jax.random.split(key)
    params = init_params(k_param)

    B = 8
    x = jax.random.normal(k_x, (B, 2), dtype=jnp.float32)

    ref = mlp2_ref(x, params)

    # Exact-precision path (f32 MXU operands): strict check.
    out_f32 = jax.block_until_ready(mlp2_forward(x, params, mxu_dtype=jnp.float32))
    assert out_f32.shape == (B, 1), out_f32.shape
    assert jnp.allclose(out_f32, ref, atol=1e-4, rtol=1e-4), \
        f"f32 path max abs err = {jnp.max(jnp.abs(out_f32 - ref))}"

    # Default fast path (bf16 MXU operands, f32 accumulation): relaxed tolerance
    # vs the fp32 reference (bf16 operand rounding through two MXU layers).
    out_bf16 = jax.block_until_ready(mlp2_forward(x, params))
    assert out_bf16.shape == (B, 1), out_bf16.shape
    assert jnp.allclose(out_bf16, ref, atol=2e-1, rtol=5e-2), \
        f"bf16 path max abs err = {jnp.max(jnp.abs(out_bf16 - ref))}"

    print("KERNEL_OK")
</pallas_src>

<mosaic_0001>
module attributes {stable_mosaic.version = 11 : i64} {
  func.func @mlp2_kernel(%arg0: i32, %arg1: memref<2x128xf32, #tpu.memory_space<vmem>>, %arg2: memref<32x128xf32, #tpu.memory_space<vmem>>, %arg3: memref<32x16xf32, #tpu.memory_space<vmem>>, %arg4: memref<32x32xf32, #tpu.memory_space<vmem>>, %arg5: memref<1x128xf32, #tpu.memory_space<vmem>>) attributes {dimension_semantics = [#tpu.dimension_semantics<parallel>], iteration_bounds = array<i64: 1>, scalar_prefetch = 0 : i64, scratch_operands = 0 : i64, tpu.core_type = #tpu.core_type<tc>, window_params = [{transform_indices = @transform_0, window_bounds = array<i64: 2, 128>}, {pipeline_mode = #tpu.pipeline_mode<synchronous>, transform_indices = @transform_1, window_bounds = array<i64: 32, 128>}, {pipeline_mode = #tpu.pipeline_mode<synchronous>, transform_indices = @transform_2, window_bounds = array<i64: 32, 16>}, {pipeline_mode = #tpu.pipeline_mode<synchronous>, transform_indices = @transform_3, window_bounds = array<i64: 32, 32>}, {transform_indices = @transform_4, window_bounds = array<i64: 1, 128>}]} {
    %c0 = arith.constant 0 : index
    %c0_0 = arith.constant 0 : index
    %0 = vector.load %arg1[%c0, %c0_0] : memref<2x128xf32, #tpu.memory_space<vmem>>, vector<2x128xf32>
    %c0_1 = arith.constant 0 : index
    %c0_2 = arith.constant 0 : index
    %1 = vector.load %arg2[%c0_1, %c0_2] : memref<32x128xf32, #tpu.memory_space<vmem>>, vector<32x128xf32>
    %2 = vector.extract_strided_slice %1 {offsets = [0, 0], sizes = [16, 1], strides = [1, 1]} : vector<32x128xf32> to vector<16x1xf32>
    %3 = vector.extract_strided_slice %1 {offsets = [0, 1], sizes = [16, 1], strides = [1, 1]} : vector<32x128xf32> to vector<16x1xf32>
    %4 = vector.extract_strided_slice %1 {offsets = [0, 2], sizes = [16, 1], strides = [1, 1]} : vector<32x128xf32> to vector<16x1xf32>
    %5 = vector.extract_strided_slice %1 {offsets = [0, 3], sizes = [32, 1], strides = [1, 1]} : vector<32x128xf32> to vector<32x1xf32>
    %6 = vector.extract_strided_slice %1 {offsets = [0, 4], sizes = [32, 1], strides = [1, 1]} : vector<32x128xf32> to vector<32x1xf32>
    %7 = vector.extract_strided_slice %1 {offsets = [0, 5], sizes = [32, 1], strides = [1, 1]} : vector<32x128xf32> to vector<32x1xf32>
    %8 = vector.extract_strided_slice %1 {offsets = [0, 6], sizes = [1, 1], strides = [1, 1]} : vector<32x128xf32> to vector<1x1xf32>
    %9 = vector.extract_strided_slice %0 {offsets = [0, 0], sizes = [1, 128], strides = [1, 1]} : vector<2x128xf32> to vector<1x128xf32>
    %10 = vector.broadcast %2 : vector<16x1xf32> to vector<16x128xf32>
    %11 = vector.broadcast %9 : vector<1x128xf32> to vector<16x128xf32>
    %12 = arith.mulf %10, %11 : vector<16x128xf32>
    %13 = vector.extract_strided_slice %0 {offsets = [1, 0], sizes = [1, 128], strides = [1, 1]} : vector<2x128xf32> to vector<1x128xf32>
    %14 = vector.broadcast %3 : vector<16x1xf32> to vector<16x128xf32>
    %15 = vector.broadcast %13 : vector<1x128xf32> to vector<16x128xf32>
    %16 = arith.mulf %14, %15 : vector<16x128xf32>
    %17 = arith.addf %12, %16 : vector<16x128xf32>
    %18 = vector.broadcast %4 : vector<16x1xf32> to vector<16x128xf32>
    %19 = arith.addf %17, %18 : vector<16x128xf32>
    %cst = arith.constant 0.000000e+00 : f32
    %20 = vector.broadcast %cst : f32 to vector<16x128xf32>
    %21 = arith.maximumf %19, %20 : vector<16x128xf32>
    %c0_3 = arith.constant 0 : index
    %c0_4 = arith.constant 0 : index
    %22 = vector.load %arg3[%c0_3, %c0_4] : memref<32x16xf32, #tpu.memory_space<vmem>>, vector<32x16xf32>
    %cst_5 = arith.constant dense<0.000000e+00> : vector<32x128xf32>
    %23 = tpu.matmul %22, %21, %cst_5 {dimension_numbers = #tpu.dot_dimension_numbers<[1], [0], [0], [1], [0, 0, 1, 1], [], []>} : vector<32x16xf32>, vector<16x128xf32>, vector<32x128xf32> -> vector<32x128xf32>
    %24 = vector.broadcast %5 : vector<32x1xf32> to vector<32x128xf32>
    %25 = arith.addf %23, %24 : vector<32x128xf32>
    %cst_6 = arith.constant 0.000000e+00 : f32
    %26 = vector.broadcast %cst_6 : f32 to vector<32x128xf32>
    %27 = arith.maximumf %25, %26 : vector<32x128xf32>
    %c0_7 = arith.constant 0 : index
    %c0_8 = arith.constant 0 : index
    %28 = vector.load %arg4[%c0_7, %c0_8] : memref<32x32xf32, #tpu.memory_space<vmem>>, vector<32x32xf32>
    %cst_9 = arith.constant dense<0.000000e+00> : vector<32x128xf32>
    %29 = tpu.matmul %28, %27, %cst_9 {dimension_numbers = #tpu.dot_dimension_numbers<[1], [0], [0], [1], [0, 0, 1, 1], [], []>} : vector<32x32xf32>, vector<32x128xf32>, vector<32x128xf32> -> vector<32x128xf32>
    %30 = vector.broadcast %6 : vector<32x1xf32> to vector<32x128xf32>
    %31 = arith.addf %29, %30 : vector<32x128xf32>
    %cst_10 = arith.constant 0.000000e+00 : f32
    %32 = vector.broadcast %cst_10 : f32 to vector<32x128xf32>
    %33 = arith.maximumf %31, %32 : vector<32x128xf32>
    %34 = vector.broadcast %7 : vector<32x1xf32> to vector<32x128xf32>
    %35 = arith.mulf %34, %33 : vector<32x128xf32>
    %cst_11 = arith.constant dense<0.000000e+00> : vector<128xf32>
    %36 = vector.multi_reduction <add>, %35, %cst_11 [0] : vector<32x128xf32> to vector<128xf32>
    %37 = vector.shape_cast %36 : vector<128xf32> to vector<1x128xf32>
    %38 = vector.broadcast %8 : vector<1x1xf32> to vector<1x128xf32>
    %39 = arith.addf %37, %38 : vector<1x128xf32>
    %c0_12 = arith.constant 0 : index
    %c0_13 = arith.constant 0 : index
    %40 = vector.load %arg5[%c0_12, %c0_13] : memref<1x128xf32, #tpu.memory_space<vmem>>, vector<1x128xf32>
    tpu.vector_store %arg5[%c0_12, %c0_13], %39 {strides = array<i32>} : memref<1x128xf32, #tpu.memory_space<vmem>>, vector<1x128xf32>,
    return
  }
  func.func @transform_0(%arg0: i32) -> (i32, i32) {
    %c0_i32 = arith.constant 0 : i32
    %c0_i32_0 = arith.constant 0 : i32
    return %c0_i32, %arg0 : i32, i32
  }
  func.func @transform_1(%arg0: i32) -> (i32, i32) {
    %c0_i32 = arith.constant 0 : i32
    %c0_i32_0 = arith.constant 0 : i32
    %c0_i32_1 = arith.constant 0 : i32
    return %c0_i32, %c0_i32_0 : i32, i32
  }
  func.func @transform_2(%arg0: i32) -> (i32, i32) {
    %c0_i32 = arith.constant 0 : i32
    %c0_i32_0 = arith.constant 0 : i32
    %c0_i32_1 = arith.constant 0 : i32
    return %c0_i32, %c0_i32_0 : i32, i32
  }
  func.func @transform_3(%arg0: i32) -> (i32, i32) {
    %c0_i32 = arith.constant 0 : i32
    %c0_i32_0 = arith.constant 0 : i32
    %c0_i32_1 = arith.constant 0 : i32
    return %c0_i32, %c0_i32_0 : i32, i32
  }
  func.func @transform_4(%arg0: i32) -> (i32, i32) {
    %c0_i32 = arith.constant 0 : i32
    %c0_i32_0 = arith.constant 0 : i32
    return %c0_i32, %arg0 : i32, i32
  }
}

</mosaic_0001>

<bundles_post_ra>
// kernel: tpu_custom_call.1
= control target key start
LH: loop header
LB: loop body
LE: loop exit
PB: predicated region body
PF: predicated region fallthrough
CT: control target
= control target key end

     0   :  { %9 = vsyncpa [#allocation3], 0  ;;  %s617_s0 = inlined_call_operand.vmem [shape: f32[2,128], index: 0, kind: input, shape index: {}]   ;;  %s618_s1 = inlined_call_operand.vmem [shape: f32[32,128], index: 1, kind: input, shape index: {}]   ;;  %s619_s2 = inlined_call_operand.vmem [shape: f32[32,16], index: 2, kind: input, shape index: {}]   ;;  %s620_s3 = inlined_call_operand.hbm [shape: f32[32,32], index: 3, kind: input, shape index: {}]   ;;  %s621_s4 = inlined_call_operand.hbm [shape: f32[1,128], index: 4, kind: output, shape index: {}]  }
   0x1   :  { %10 = vsyncpa [#allocation4], 0  ;;  %s505_s15 = smov [#allocation2]   ;;  %s457_s19 = scalar_lea.hbm %s620_s3, 512 }
   0x2   :  { %s22_s16 = sshll.u32 %s505_s15, 4  ;;  %p458_p0 = scmp.ne.s32.totalorder %s620_s3, %s457_s19  ;;  %s23_s16 = int_to_ptr.vmem [resolvable:$true] %s22_s16 }
   0x3   :  { %p461_p1 = scmp.lt.u32.totalorder %s457_s19, %s620_s3 }
   0x5   :  { %p463_p2 = pnand %p461_p1, %p458_p0 }
   0x7   :  { %466 = shalt.err (!%p463_p2)
}
   0x8   :  { %s467_s24 = scalar_lea.vmem %s23_s16, 512  ;;  %p472_p4 = scmp.lt.s32.totalorder %s23_s16, %s23_s16 }
   0x9   :  { %p468_p3 = scmp.ne.s32.totalorder %s23_s16, %s467_s24  ;;  %p473_p5 = scmp.lt.s32.totalorder %s467_s24, %s467_s24 }
   0xb   :  { %p474_p6 = por %p473_p5, %p472_p4 }
   0xd   :  { %p475_p7 = pnand %p474_p6, %p468_p3 }
   0xf   :  { %478 = shalt.err (!%p475_p7)
}
  0x10   :  { %s506_s25 = smov 128   ;;  %s507_s26 = smov 8  }
  0x11   :  { %28 = dma.hbm_to_vmem [thread:$0]  %s620_s3, 512, %s23_s16, [#allocation3], %s506_s25, %s506_s25, %s507_s26  }
  0x12   :  { %501 = dma.done.wait [#allocation3], 512  }
  0x13   :  { %502 = vsyncadd [#allocation3], 4294966784  ;;  %v508_v0 = vmov 1   ;;  %v509_v1 = vmov 0   ;;  %v556_v2 = vld [vmem:[%s618_s1] sm:$0xff]  ;;  %v563_v3 = vld [vmem:[%s618_s1 + $0x8] sm:$0xff]  ;;  %v47_v9 = vlaneseq }
  0x14   :  { %447 = vset.pattern.permute.xlu1 %v508_v0  ;;  %446 = vset.pattern.permute.xlu0 %v509_v1  ;;  %v510_v4 = vmov 2   ;;  %v81_v5 = vld [vmem:[%s619_s2] sm:$0xff]  ;;  %vm103_vm0 = vcmask 130048   ;;  %v511_v6 = vmov 3   ;;  %v35_v7 = vld [vmem:[%s618_s1 + $0x10] sm:$0xff]  ;;  %v36_v8 = vld [vmem:[%s618_s1 + $0x18] sm:$0xff] }
  0x15   :  { %54 = vperm.xlu1 %447, %v556_v2   ;;  %39 = vperm.xlu0 %446, %v556_v2   ;;  %v48_v10 = vshrl.u32 %v47_v9, 7  ;;  %v32_v13 = vld [vmem:[%s617_s0] sm:$0x3]  ;;  %v82_v33 = vld [vmem:[%s619_s2 + $0x8] sm:$0xff]  ;;  %v83_v34 = vld [vmem:[%s619_s2 + $0x10] sm:$0xff]  ;;  %vm225_vm1 = vcmask 261120  }
  0x16   :  { %403 = vmatprep.mubr.msk.f32.mxu0 %vm103_vm0, %v81_v5  ;;  %v84_v35 = vld [vmem:[%s619_s2 + $0x18] sm:$0xff]  ;;  %v205_v36 = vld [vmem:[#allocation2] sm:$0xff]  ;;  %v512_v37 = vmov 4   ;;  %v513_v38 = vmov 5   ;;  %v514_v39 = vmov 6   ;;  %v206_v58 = vld [vmem:[#allocation2 + $0x8] sm:$0xff] }
  0x17   :  { %v63_v11 = vsub.s32 1, %v48_v10  ;;  %v49_v12 = vsub.s32 0, %v48_v10  ;;  %417 = vmatprep.mubr.msk.f32.mxu1 %vm225_vm1, %v205_v36  ;;  %v207_v59 = vld [vmem:[#allocation2 + $0x10] sm:$0xff]  ;;  %v208_v60 = vld [vmem:[#allocation2 + $0x18] sm:$0xff]  ;;  %s515_s2 = smov [#allocation5]  }
  0x18   :  { %s368_s18 = sshll.u32 %s515_s2, 4  ;;  %s369_s18 = int_to_ptr.vmem [resolvable:$true] %s368_s18 }
  0x19   :  { %58 = vperm.xlu1 %447, %v563_v3   ;;  %44 = vperm.xlu0 %446, %v563_v3   ;;  %v64_v15 = vrot.slane %v32_v13, %v63_v11  ;;  %v50_v17 = vrot.slane %v32_v13, %v49_v12  ;;  %s479_s19 = scalar_lea.vmem %s369_s18, 16  ;;  %s483_s20 = scalar_lea.vmem %s369_s18, 32 }
  0x1a   :  { %p480_p8 = scmp.ne.s32.totalorder %s369_s18, %s479_s19  ;;  %p484_p9 = scmp.lt.s32.totalorder %s369_s18, %s369_s18 }
  0x1b   :  { %p485_p10 = scmp.lt.s32.totalorder %s483_s20, %s479_s19 }
  0x1d   :  { %449 = vset.pattern.permute.xlu1 %v510_v4  ;;  %448 = vset.pattern.permute.xlu0 %v510_v4  ;;  %p486_p11 = por %p485_p10, %p484_p9 }
  0x1e   :  { %74 = vperm.xlu1 %449, %v563_v3   ;;  %70 = vperm.xlu0 %448, %v556_v2  }
  0x1f   :  { %p487_p12 = pnand %p486_p11, %p480_p8 }
  0x22   :  { %450 = vset.pattern.permute.xlu1 %v511_v6  ;;  %451 = vset.pattern.permute.xlu0 %v511_v6 }
  0x23   :  { %86 = vperm.xlu1 %450, %v556_v2   ;;  %90 = vperm.xlu0 %451, %v563_v3  }
  0x27   :  { %95 = vperm.xlu1 %450, %v35_v7   ;;  %452 = vset.pattern.permute.xlu0 %v512_v37 }
  0x28   :  { %210 = vperm.xlu0 %452, %v556_v2  }
  0x2b   :  { %100 = vperm.xlu1 %450, %v36_v8  }
  0x2c   :  { %222 = vperm.xlu0 %452, %v36_v8  }
  0x2f   :  { %453 = vset.pattern.permute.xlu1 %v512_v37 }
  0x30   :  { %214 = vperm.xlu1 %453, %v563_v3   ;;  %455 = vset.pattern.permute.xlu0 %v513_v38 }
  0x31   :  { %332 = vperm.xlu0 %455, %v563_v3  }
  0x34   :  { %218 = vperm.xlu1 %453, %v35_v7  }
  0x35   :  { %456 = vset.pattern.permute.xlu0 %v514_v39 }
  0x36   :  { %357 = vperm.xlu0 %456, %v556_v2  }
  0x38   :  { %454 = vset.pattern.permute.xlu1 %v513_v38 }
  0x39   :  { %328 = vperm.xlu1 %454, %v556_v2  }
  0x3d   :  { %336 = vperm.xlu1 %454, %v35_v7  }
  0x41   :  { %340 = vperm.xlu1 %454, %v36_v8  }
  0x94   :  { %v55_v14 = vpop.permute.xlu1 %54  ;;  %v40_v16 = vpop.permute.xlu0 %39 }
  0x95   :  { %v65_v18 = vmul.f32 %v64_v15, %v55_v14  ;;  %v51_v19 = vmul.f32 %v50_v17, %v40_v16 }
  0x97   :  { %v67_v25 = vadd.f32 %v65_v18, %v51_v19 }
  0x98   :  { %v59_v20 = vpop.permute.xlu1 %58  ;;  %v45_v21 = vpop.permute.xlu0 %44 }
  0x99   :  { %v66_v22 = vmul.f32 %v64_v15, %v59_v20  ;;  %v52_v23 = vmul.f32 %v50_v17, %v45_v21 }
  0x9b   :  { %v68_v24 = vadd.f32 %v66_v22, %v52_v23 }
  0x9d   :  { %v75_v26 = vpop.permute.xlu1 %74  ;;  %v71_v27 = vpop.permute.xlu0 %70 }
  0x9e   :  { %v78_v28 = vadd.f32 %v75_v26, %v68_v24  ;;  %v77_v29 = vadd.f32 %v71_v27, %v67_v25 }
  0xa0   :  { %v80_v30 = vmax.f32 %v78_v28, 0.0  ;;  %v79_v31 = vmax.f32 %v77_v29, 0.0 }
  0xa2   :  { %v423_v32 = vpack.c.bf16 %v80_v30, %v79_v31  ;;  %v87_v40 = vpop.permute.xlu1 %86  ;;  %v91_v42 = vpop.permute.xlu0 %90 }
  0xa4   :  { %424 = vmatprep.subr.bf16.mxu0 %v423_v32 }
  0xa5   :  { %426 = vmatpush3.bf16.msra.mxu0 %v423_v32 }
  0xa6   :  { %v96_v41 = vpop.permute.xlu1 %95 }
  0xa7   :  { %v211_v62 = vpop.permute.xlu0 %210 }
  0xa8   :  { %404 = vmatmul.mubr.msk.f32.vlgmr.msra.gmra.mrb[0].mxu0 %vm103_vm0, %v82_v33 }
  0xa9   :  { %406 = vmatprep.mubr.msk.f32.mxu0 %vm103_vm0, %v83_v34 }
  0xaa   :  { %v101_v48 = vpop.permute.xlu1 %100 }
  0xab   :  { %v223_v0 = vpop.permute.xlu0 %222 }
  0xac   :  { %407 = vmatmul.mubr.msk.f32.gmra.mrb[2].mxu0 %vm103_vm0, %v84_v35 }
  0xaf   :  { %v215_v61 = vpop.permute.xlu1 %214 }
  0xb0   :  { %v333_v6 = vpop.permute.xlu0 %332 }
  0xb3   :  { %v219_v63 = vpop.permute.xlu1 %218 }
  0xb5   :  { %v358_v29 = vpop.permute.xlu0 %357 }
  0xb8   :  { %v329_v1 = vpop.permute.xlu1 %328 }
  0xbc   :  { %v337_v10 = vpop.permute.xlu1 %336 }
  0xc0   :  { %v341_v20 = vpop.permute.xlu1 %340 }
 0x17b   :  { %v405_v43 = vpop.f32.mrb[0].mxu0 }
 0x17c   :  { %v188_v44 = vadd.f32 %v405_v43, %v91_v42  ;;  %v182_v45 = vpop.f32.mrb[1].mxu0 }
 0x17d   :  { %v183_v46 = vadd.f32 %v182_v45, %v87_v40 }
 0x17e   :  { %v202_v47 = vmax.f32 %v188_v44, 0.0 }
 0x17f   :  { %v201_v49 = vmax.f32 %v183_v46, 0.0  ;;  %v408_v50 = vpop.f32.mrb[2].mxu0 }
 0x180   :  { %v198_v51 = vadd.f32 %v408_v50, %v101_v48  ;;  %v192_v52 = vpop.f32.mrb[3].mxu0 }
 0x181   :  { %v193_v53 = vadd.f32 %v192_v52, %v96_v41  ;;  %v427_v54 = vpack.c.bf16 %v202_v47, %v201_v49 }
 0x182   :  { %v204_v55 = vmax.f32 %v198_v51, 0.0 }
 0x183   :  { %v203_v56 = vmax.f32 %v193_v53, 0.0  ;;  %428 = vmatprep.subr.bf16.mxu1 %v427_v54 }
 0x184   :  { %430 = vmatpush3.bf16.msra.mxu1 %v427_v54 }
 0x185   :  { %v431_v57 = vpack.c.bf16 %v204_v55, %v203_v56 }
 0x187   :  { %432 = vmatprep.subr.bf16.mxu1 %v431_v57 }
 0x188   :  { %434 = vmatpush3.bf16.msra.mxu1 %v431_v57 }
 0x18b   :  { %418 = vmatmul.mubr.msk.f32.vlgmr.msra.gmra.mrb[0].mxu1 %vm225_vm1, %v206_v58 }
 0x18c   :  { %420 = vmatprep.mubr.msk.f32.mxu1 %vm225_vm1, %v207_v59 }
 0x18f   :  { %421 = vmatmul.mubr.msk.f32.gmra.mrb[2].mxu1 %vm225_vm1, %v208_v60 }
 0x25e   :  { %v419_v2 = vpop.f32.mrb[0].mxu1 }
 0x25f   :  { %v310_v3 = vadd.f32 %v419_v2, %v215_v61  ;;  %v304_v4 = vpop.f32.mrb[1].mxu1 }
 0x260   :  { %v305_v5 = vadd.f32 %v304_v4, %v211_v62 }
 0x261   :  { %v324_v7 = vmax.f32 %v310_v3, 0.0 }
 0x262   :  { %v323_v8 = vmax.f32 %v305_v5, 0.0  ;;  %v422_v9 = vpop.f32.mrb[2].mxu1 }
 0x263   :  { %v344_v11 = vmul.f32 %v333_v6, %v324_v7  ;;  %v320_v12 = vadd.f32 %v422_v9, %v223_v0  ;;  %v314_v13 = vpop.f32.mrb[3].mxu1 }
 0x264   :  { %v343_v14 = vmul.f32 %v329_v1, %v323_v8  ;;  %v315_v15 = vadd.f32 %v314_v13, %v219_v63 }
 0x265   :  { %v326_v17 = vmax.f32 %v320_v12, 0.0 }
 0x266   :  { %v347_v16 = vadd.f32 %v344_v11, %v343_v14  ;;  %v325_v18 = vmax.f32 %v315_v15, 0.0 }
 0x267   :  { %v346_v21 = vmul.f32 %v341_v20, %v326_v17 }
 0x268   :  { %v345_v19 = vmul.f32 %v337_v10, %v325_v18 }
 0x26a   :  { %v348_v22 = vadd.f32 %v347_v16, %v345_v19 }
 0x26c   :  { %v349_v23 = vadd.f32 %v348_v22, %v346_v21 }
 0x26e   :  { %v350_v24 = vrot.slane %v349_v23, 4 }
 0x270   :  { %v351_v25 = vadd.f32 %v350_v24, %v349_v23 }
 0x272   :  { %v352_v26 = vrot.slane %v351_v25, 2 }
 0x274   :  { %v353_v27 = vadd.f32 %v352_v26, %v351_v25 }
 0x276   :  { %v354_v28 = vrot.slane %v353_v27, 1 }
 0x278   :  { %v355_v30 = vadd.f32 %v354_v28, %v353_v27 }
 0x27a   :  { %v360_v31 = vadd.f32 %v358_v29, %v355_v30 }
 0x27c   :  { %361 = vst [vmem:[#allocation5] sm:$0x1] %v360_v31 }
 0x27d   :  { %490 = shalt.err (!%p487_p12)
}
 0x27e   :  { %s491_s23 = scalar_lea.hbm %s621_s4, 16 }
 0x27f   :  { %p492_p13 = scmp.ne.s32.totalorder %s621_s4, %s491_s23  ;;  %p495_p0 = scmp.lt.u32.totalorder %s491_s23, %s621_s4 }
 0x281   :  { %p497_p1 = pnand %p495_p0, %p492_p13 }
 0x283   :  { %500 = shalt.err (!%p497_p1)
}
 0x284   :  { %371 = dma.vmem_to_hbm [thread:$0]  %s369_s18, 16, %s621_s4, [#allocation4]  }
 0x285   :  { %503 = dma.done.wait [#allocation4], 16  }
 0x286   :  { %504 = vsyncadd [#allocation4], 4294967280 }
 0x287   :  { %375 = vsyncpa [#allocation3], 1 }
 0x288   :  { %376 = vsyncpa [#allocation4], 1 }

</bundles_post_ra>
